<compile_context>
chip_gen: v5e
topology: v5e:2x2
jax: 0.10.0
libtpu: 0.0.40
codegen_flags: <defaults>
</compile_context>

<pallas_src>
import functools

import jax
import jax.numpy as jnp
from jax.experimental import pallas as pl
from jax.experimental.pallas import tpu as pltpu


def _inverted_residual_kernel(x_ref, w1_ref, b1_ref, wdw_ref, mask_ref,
                              b2_ref, w2_ref, b3_ref, o_ref, *, W):
    # x_ref   : (Cin, L)   channel-major input, L = B*H*W on the lane axis
    # w1_ref  : (hid, Cin) 1x1 expand weight (BN scale folded in)
    # b1_ref  : (hid, 1)   BN bias after expand
    # wdw_ref : (hid, 9)   depthwise taps * BN scale (per channel)
    # mask_ref: (9, L)     per-tap zero-pad / image-boundary mask (per lane)
    # b2_ref  : (hid, 1)   BN bias after depthwise
    # w2_ref  : (oup, hid) 1x1 project weight (BN scale folded in)
    # b3_ref  : (oup, 1)   BN bias after project
    # o_ref   : (oup, L)   output (residual already added)
    x = x_ref[...]                                  # (Cin, L)
    Cin, L = x.shape
    hid = w1_ref.shape[0]

    w1 = w1_ref[...]                                # (hid, Cin)
    w2 = w2_ref[...]                                # (oup, hid)

    # ---- 1x1 expand conv + BN + ReLU: unrolled lane-dense VPU FMAs ----
    h = w1[:, 0:1] * x[0:1, :]                      # (hid, L)
    for c in range(1, Cin):
        h = h + w1[:, c:c + 1] * x[c:c + 1, :]
    h = jnp.maximum(h + b1_ref[...], 0.0)

    # ---- 3x3 depthwise conv (stride 1, pad 1) + BN + ReLU ----
    # Shifts are lane rotations (XLU); zero padding and image/batch
    # boundaries are handled by the per-lane masks, so rolled-in garbage
    # (wraparound / neighbouring image) contributes exactly zero.
    acc = h * wdw_ref[:, 4:5]                       # center tap: mask == 1
    for dy in range(3):
        for dx in range(3):
            t = dy * 3 + dx
            off = (dy - 1) * W + (dx - 1)
            if off == 0:
                continue
            hs = pltpu.roll(h, (-off) % L, axis=1)  # hs[:, p] = h[:, p + off]
            acc = acc + (hs * mask_ref[t:t + 1, :]) * wdw_ref[:, t:t + 1]
    a = jnp.maximum(acc + b2_ref[...], 0.0)         # (hid, L)

    # ---- 1x1 project conv + BN + residual: unrolled lane-dense VPU FMAs ----
    y = w2[:, 0:1] * a[0:1, :]                      # (oup, L)
    for j in range(1, hid):
        y = y + w2[:, j:j + 1] * a[j:j + 1, :]
    y = y + b3_ref[...] + x                         # use_res_connect (inp==oup)
    o_ref[...] = y.astype(o_ref.dtype)


def inverted_residual(x_nchw, params):
    """x_nchw: (B, Cin, H, W) float32 -> (B, oup, H, W) float32."""
    w1, s1, b1, wdw, s2, b2, w2, s3, b3 = params
    B, Cin, H, W = x_nchw.shape
    hid = w1.shape[1]
    oup = w2.shape[1]
    HW = H * W
    L = B * HW                        # lane axis: batch folded into spatial

    # ---- fold BatchNorm scales into conv weights (free, wrapper-side) ----
    w1k = (w1 * s1).T                 # (hid, Cin):  w1[c,j] * s1[j]
    b1k = b1.T                        # (hid, 1)
    wdwk = (wdw * s2).T               # (hid, 9):    per-channel tap * s2
    b2k = b2.T                        # (hid, 1)
    w2k = (w2 * s3).T                 # (oup, hid):  w2[j,o] * s3[o]
    b3k = b3.T                        # (oup, 1)

    # ---- per-tap zero-padding / image-boundary masks (per lane only) ----
    row = jnp.arange(HW, dtype=jnp.int32) // W
    col = jnp.arange(HW, dtype=jnp.int32) % W
    masks = []
    for dy in range(3):
        for dx in range(3):
            ok = ((row + (dy - 1) >= 0) & (row + (dy - 1) < H) &
                  (col + (dx - 1) >= 0) & (col + (dx - 1) < W))
            masks.append(ok.astype(jnp.float32))
    masks = jnp.tile(jnp.stack(masks, 0), (1, B))    # (9, L), same per image

    # ---- channel-major / spatial-on-lanes repack: (B,C,H,W) -> (C, B*H*W) ----
    x2d = jnp.transpose(x_nchw, (1, 0, 2, 3)).reshape(Cin, L)

    kernel = functools.partial(_inverted_residual_kernel, W=W)
    vmem = pl.BlockSpec(memory_space=pltpu.MemorySpace.VMEM)

    out2d = pl.pallas_call(
        kernel,
        out_shape=jax.ShapeDtypeStruct((oup, L), jnp.float32),
        in_specs=[vmem] * 8,
        out_specs=vmem,
    )(x2d, w1k, b1k, wdwk, masks, b2k, w2k, b3k)

    return out2d.reshape(oup, B, H, W).transpose(1, 0, 2, 3)


def make_bn(key, c, eps=1e-5):
    """Deterministic eval-mode BatchNorm folded into (scale, bias) of shape (1, c)."""
    k1, k2, k3, k4 = jax.random.split(key, 4)
    gamma = jax.random.uniform(k1, (c,), jnp.float32, 0.5, 1.5)
    beta = jax.random.normal(k2, (c,), jnp.float32) * 0.1
    mean = jax.random.normal(k3, (c,), jnp.float32) * 0.1
    var = jax.random.uniform(k4, (c,), jnp.float32, 0.5, 1.5)
    scale = gamma / jnp.sqrt(var + eps)
    bias = beta - mean * scale
    return scale.reshape(1, c), bias.reshape(1, c)


def reference(x_nchw, params):
    """Pure-JAX NHWC reference of the same forward pass (f32 throughout)."""
    w1, s1, b1, wdw, s2, b2, w2, s3, b3 = params
    x = jnp.transpose(x_nchw, (0, 2, 3, 1))
    B, H, W, Cin = x.shape
    hid = w1.shape[1]
    h = jnp.einsum('bhwc,cd->bhwd', x, w1,
                   precision=jax.lax.Precision.HIGHEST)
    h = jnp.maximum(h * s1 + b1, 0.0)
    hp = jnp.pad(h, ((0, 0), (1, 1), (1, 1), (0, 0)))
    wdw3 = wdw.reshape(3, 3, hid)
    acc = jnp.zeros((B, H, W, hid), jnp.float32)
    for dy in range(3):
        for dx in range(3):
            acc = acc + hp[:, dy:dy + H, dx:dx + W, :] * wdw3[dy, dx]
    acc = jnp.maximum(acc * s2 + b2, 0.0)
    y = jnp.einsum('bhwc,cd->bhwd', acc, w2,
                   precision=jax.lax.Precision.HIGHEST) * s3 + b3
    return jnp.transpose(y + x, (0, 3, 1, 2))


if __name__ == "__main__":
    # Module config: inp=4, oup=4, stride=1, expand_ratio=2 -> hidden=8, residual on
    B, Cin, H, W = 2, 4, 16, 16
    expand_ratio = 2
    oup = 4
    hid = int(Cin * expand_ratio)

    key = jax.random.PRNGKey(0)
    kx, kw1, kbn1, kdw, kbn2, kw2, kbn3 = jax.random.split(key, 7)

    x = jax.random.normal(kx, (B, Cin, H, W), jnp.float32)

    # 1x1 expand conv: torch weight (hid, Cin, 1, 1) -> (Cin, hid)
    w1 = jax.random.normal(kw1, (Cin, hid), jnp.float32) * 0.2
    s1, b1 = make_bn(kbn1, hid)
    # 3x3 depthwise conv: torch weight (hid, 1, 3, 3) -> tap-major (9, hid)
    wdw = jax.random.normal(kdw, (9, hid), jnp.float32) * 0.2
    s2, b2 = make_bn(kbn2, hid)
    # 1x1 project conv: torch weight (oup, hid, 1, 1) -> (hid, oup)
    w2 = jax.random.normal(kw2, (hid, oup), jnp.float32) * 0.2
    s3, b3 = make_bn(kbn3, oup)

    params = (w1, s1, b1, wdw, s2, b2, w2, s3, b3)

    out = inverted_residual(x, params)
    out = jax.block_until_ready(out)

    ref = jax.block_until_ready(reference(x, params))
    assert out.shape == (B, oup, H, W)
    assert jnp.allclose(out, ref, rtol=1e-4, atol=1e-4), \
        f"max abs err {jnp.max(jnp.abs(out - ref))}"

    print("KERNEL_OK")
</pallas_src>

<mosaic_0001>
module attributes {stable_mosaic.version = 11 : i64} {
  func.func @_inverted_residual_kernel(%arg0: memref<4x512xf32, #tpu.memory_space<vmem>>, %arg1: memref<8x4xf32, #tpu.memory_space<vmem>>, %arg2: memref<8x1xf32, #tpu.memory_space<vmem>>, %arg3: memref<8x9xf32, #tpu.memory_space<vmem>>, %arg4: memref<9x512xf32, #tpu.memory_space<vmem>>, %arg5: memref<8x1xf32, #tpu.memory_space<vmem>>, %arg6: memref<4x8xf32, #tpu.memory_space<vmem>>, %arg7: memref<4x1xf32, #tpu.memory_space<vmem>>, %arg8: memref<4x512xf32, #tpu.memory_space<vmem>>) attributes {dimension_semantics = [], scalar_prefetch = 0 : i64, scratch_operands = 0 : i64, tpu.core_type = #tpu.core_type<tc>} {
    %c0 = arith.constant 0 : index
    %c0_0 = arith.constant 0 : index
    %0 = vector.load %arg0[%c0, %c0_0] : memref<4x512xf32, #tpu.memory_space<vmem>>, vector<4x512xf32>
    %c0_1 = arith.constant 0 : index
    %c0_2 = arith.constant 0 : index
    %1 = vector.load %arg1[%c0_1, %c0_2] : memref<8x4xf32, #tpu.memory_space<vmem>>, vector<8x4xf32>
    %c0_3 = arith.constant 0 : index
    %c0_4 = arith.constant 0 : index
    %2 = vector.load %arg6[%c0_3, %c0_4] : memref<4x8xf32, #tpu.memory_space<vmem>>, vector<4x8xf32>
    %3 = vector.extract_strided_slice %1 {offsets = [0, 0], sizes = [8, 1], strides = [1, 1]} : vector<8x4xf32> to vector<8x1xf32>
    %4 = vector.extract_strided_slice %0 {offsets = [0, 0], sizes = [1, 512], strides = [1, 1]} : vector<4x512xf32> to vector<1x512xf32>
    %5 = vector.broadcast %3 : vector<8x1xf32> to vector<8x512xf32>
    %6 = vector.broadcast %4 : vector<1x512xf32> to vector<8x512xf32>
    %7 = arith.mulf %5, %6 : vector<8x512xf32>
    %8 = vector.extract_strided_slice %1 {offsets = [0, 1], sizes = [8, 1], strides = [1, 1]} : vector<8x4xf32> to vector<8x1xf32>
    %9 = vector.extract_strided_slice %0 {offsets = [1, 0], sizes = [1, 512], strides = [1, 1]} : vector<4x512xf32> to vector<1x512xf32>
    %10 = vector.broadcast %8 : vector<8x1xf32> to vector<8x512xf32>
    %11 = vector.broadcast %9 : vector<1x512xf32> to vector<8x512xf32>
    %12 = arith.mulf %10, %11 : vector<8x512xf32>
    %13 = arith.addf %7, %12 : vector<8x512xf32>
    %14 = vector.extract_strided_slice %1 {offsets = [0, 2], sizes = [8, 1], strides = [1, 1]} : vector<8x4xf32> to vector<8x1xf32>
    %15 = vector.extract_strided_slice %0 {offsets = [2, 0], sizes = [1, 512], strides = [1, 1]} : vector<4x512xf32> to vector<1x512xf32>
    %16 = vector.broadcast %14 : vector<8x1xf32> to vector<8x512xf32>
    %17 = vector.broadcast %15 : vector<1x512xf32> to vector<8x512xf32>
    %18 = arith.mulf %16, %17 : vector<8x512xf32>
    %19 = arith.addf %13, %18 : vector<8x512xf32>
    %20 = vector.extract_strided_slice %1 {offsets = [0, 3], sizes = [8, 1], strides = [1, 1]} : vector<8x4xf32> to vector<8x1xf32>
    %21 = vector.extract_strided_slice %0 {offsets = [3, 0], sizes = [1, 512], strides = [1, 1]} : vector<4x512xf32> to vector<1x512xf32>
    %22 = vector.broadcast %20 : vector<8x1xf32> to vector<8x512xf32>
    %23 = vector.broadcast %21 : vector<1x512xf32> to vector<8x512xf32>
    %24 = arith.mulf %22, %23 : vector<8x512xf32>
    %25 = arith.addf %19, %24 : vector<8x512xf32>
    %c0_5 = arith.constant 0 : index
    %c0_6 = arith.constant 0 : index
    %26 = vector.load %arg2[%c0_5, %c0_6] : memref<8x1xf32, #tpu.memory_space<vmem>>, vector<8x1xf32>
    %27 = vector.broadcast %26 : vector<8x1xf32> to vector<8x512xf32>
    %28 = arith.addf %25, %27 : vector<8x512xf32>
    %cst = arith.constant 0.000000e+00 : f32
    %29 = vector.broadcast %cst : f32 to vector<8x512xf32>
    %30 = arith.maximumf %28, %29 : vector<8x512xf32>
    %c0_7 = arith.constant 0 : index
    %c4 = arith.constant 4 : index
    %31 = vector.load %arg3[%c0_7, %c4] : memref<8x9xf32, #tpu.memory_space<vmem>>, vector<8x1xf32>
    %32 = vector.broadcast %31 : vector<8x1xf32> to vector<8x512xf32>
    %33 = arith.mulf %30, %32 : vector<8x512xf32>
    %c17_i32 = arith.constant 17 : i32
    %34 = tpu.dynamic_rotate %30 by %c17_i32 dim 1 : vector<8x512xf32>, i32 -> vector<8x512xf32>
    %c0_8 = arith.constant 0 : index
    %c0_9 = arith.constant 0 : index
    %35 = vector.load %arg4[%c0_8, %c0_9] : memref<9x512xf32, #tpu.memory_space<vmem>>, vector<1x512xf32>
    %36 = vector.broadcast %35 : vector<1x512xf32> to vector<8x512xf32>
    %37 = arith.mulf %34, %36 : vector<8x512xf32>
    %c0_10 = arith.constant 0 : index
    %c0_11 = arith.constant 0 : index
    %38 = vector.load %arg3[%c0_10, %c0_11] : memref<8x9xf32, #tpu.memory_space<vmem>>, vector<8x1xf32>
    %39 = vector.broadcast %38 : vector<8x1xf32> to vector<8x512xf32>
    %40 = arith.mulf %37, %39 : vector<8x512xf32>
    %41 = arith.addf %33, %40 : vector<8x512xf32>
    %c16_i32 = arith.constant 16 : i32
    %42 = tpu.dynamic_rotate %30 by %c16_i32 dim 1 : vector<8x512xf32>, i32 -> vector<8x512xf32>
    %c1 = arith.constant 1 : index
    %c0_12 = arith.constant 0 : index
    %43 = vector.load %arg4[%c1, %c0_12] : memref<9x512xf32, #tpu.memory_space<vmem>>, vector<1x512xf32>
    %44 = vector.broadcast %43 : vector<1x512xf32> to vector<8x512xf32>
    %45 = arith.mulf %42, %44 : vector<8x512xf32>
    %c0_13 = arith.constant 0 : index
    %c1_14 = arith.constant 1 : index
    %46 = vector.load %arg3[%c0_13, %c1_14] : memref<8x9xf32, #tpu.memory_space<vmem>>, vector<8x1xf32>
    %47 = vector.broadcast %46 : vector<8x1xf32> to vector<8x512xf32>
    %48 = arith.mulf %45, %47 : vector<8x512xf32>
    %49 = arith.addf %41, %48 : vector<8x512xf32>
    %c15_i32 = arith.constant 15 : i32
    %50 = tpu.dynamic_rotate %30 by %c15_i32 dim 1 : vector<8x512xf32>, i32 -> vector<8x512xf32>
    %c2 = arith.constant 2 : index
    %c0_15 = arith.constant 0 : index
    %51 = vector.load %arg4[%c2, %c0_15] : memref<9x512xf32, #tpu.memory_space<vmem>>, vector<1x512xf32>
    %52 = vector.broadcast %51 : vector<1x512xf32> to vector<8x512xf32>
    %53 = arith.mulf %50, %52 : vector<8x512xf32>
    %c0_16 = arith.constant 0 : index
    %c2_17 = arith.constant 2 : index
    %54 = vector.load %arg3[%c0_16, %c2_17] : memref<8x9xf32, #tpu.memory_space<vmem>>, vector<8x1xf32>
    %55 = vector.broadcast %54 : vector<8x1xf32> to vector<8x512xf32>
    %56 = arith.mulf %53, %55 : vector<8x512xf32>
    %57 = arith.addf %49, %56 : vector<8x512xf32>
    %c1_i32 = arith.constant 1 : i32
    %58 = tpu.dynamic_rotate %30 by %c1_i32 dim 1 : vector<8x512xf32>, i32 -> vector<8x512xf32>
    %c3 = arith.constant 3 : index
    %c0_18 = arith.constant 0 : index
    %59 = vector.load %arg4[%c3, %c0_18] : memref<9x512xf32, #tpu.memory_space<vmem>>, vector<1x512xf32>
    %60 = vector.broadcast %59 : vector<1x512xf32> to vector<8x512xf32>
    %61 = arith.mulf %58, %60 : vector<8x512xf32>
    %c0_19 = arith.constant 0 : index
    %c3_20 = arith.constant 3 : index
    %62 = vector.load %arg3[%c0_19, %c3_20] : memref<8x9xf32, #tpu.memory_space<vmem>>, vector<8x1xf32>
    %63 = vector.broadcast %62 : vector<8x1xf32> to vector<8x512xf32>
    %64 = arith.mulf %61, %63 : vector<8x512xf32>
    %65 = arith.addf %57, %64 : vector<8x512xf32>
    %c511_i32 = arith.constant 511 : i32
    %66 = tpu.dynamic_rotate %30 by %c511_i32 dim 1 : vector<8x512xf32>, i32 -> vector<8x512xf32>
    %c5 = arith.constant 5 : index
    %c0_21 = arith.constant 0 : index
    %67 = vector.load %arg4[%c5, %c0_21] : memref<9x512xf32, #tpu.memory_space<vmem>>, vector<1x512xf32>
    %68 = vector.broadcast %67 : vector<1x512xf32> to vector<8x512xf32>
    %69 = arith.mulf %66, %68 : vector<8x512xf32>
    %c0_22 = arith.constant 0 : index
    %c5_23 = arith.constant 5 : index
    %70 = vector.load %arg3[%c0_22, %c5_23] : memref<8x9xf32, #tpu.memory_space<vmem>>, vector<8x1xf32>
    %71 = vector.broadcast %70 : vector<8x1xf32> to vector<8x512xf32>
    %72 = arith.mulf %69, %71 : vector<8x512xf32>
    %73 = arith.addf %65, %72 : vector<8x512xf32>
    %c497_i32 = arith.constant 497 : i32
    %74 = tpu.dynamic_rotate %30 by %c497_i32 dim 1 : vector<8x512xf32>, i32 -> vector<8x512xf32>
    %c6 = arith.constant 6 : index
    %c0_24 = arith.constant 0 : index
    %75 = vector.load %arg4[%c6, %c0_24] : memref<9x512xf32, #tpu.memory_space<vmem>>, vector<1x512xf32>
    %76 = vector.broadcast %75 : vector<1x512xf32> to vector<8x512xf32>
    %77 = arith.mulf %74, %76 : vector<8x512xf32>
    %c0_25 = arith.constant 0 : index
    %c6_26 = arith.constant 6 : index
    %78 = vector.load %arg3[%c0_25, %c6_26] : memref<8x9xf32, #tpu.memory_space<vmem>>, vector<8x1xf32>
    %79 = vector.broadcast %78 : vector<8x1xf32> to vector<8x512xf32>
    %80 = arith.mulf %77, %79 : vector<8x512xf32>
    %81 = arith.addf %73, %80 : vector<8x512xf32>
    %c496_i32 = arith.constant 496 : i32
    %82 = tpu.dynamic_rotate %30 by %c496_i32 dim 1 : vector<8x512xf32>, i32 -> vector<8x512xf32>
    %c7 = arith.constant 7 : index
    %c0_27 = arith.constant 0 : index
    %83 = vector.load %arg4[%c7, %c0_27] : memref<9x512xf32, #tpu.memory_space<vmem>>, vector<1x512xf32>
    %84 = vector.broadcast %83 : vector<1x512xf32> to vector<8x512xf32>
    %85 = arith.mulf %82, %84 : vector<8x512xf32>
    %c0_28 = arith.constant 0 : index
    %c7_29 = arith.constant 7 : index
    %86 = vector.load %arg3[%c0_28, %c7_29] : memref<8x9xf32, #tpu.memory_space<vmem>>, vector<8x1xf32>
    %87 = vector.broadcast %86 : vector<8x1xf32> to vector<8x512xf32>
    %88 = arith.mulf %85, %87 : vector<8x512xf32>
    %89 = arith.addf %81, %88 : vector<8x512xf32>
    %c495_i32 = arith.constant 495 : i32
    %90 = tpu.dynamic_rotate %30 by %c495_i32 dim 1 : vector<8x512xf32>, i32 -> vector<8x512xf32>
    %c8 = arith.constant 8 : index
    %c0_30 = arith.constant 0 : index
    %91 = vector.load %arg4[%c8, %c0_30] : memref<9x512xf32, #tpu.memory_space<vmem>>, vector<1x512xf32>
    %92 = vector.broadcast %91 : vector<1x512xf32> to vector<8x512xf32>
    %93 = arith.mulf %90, %92 : vector<8x512xf32>
    %c0_31 = arith.constant 0 : index
    %c8_32 = arith.constant 8 : index
    %94 = vector.load %arg3[%c0_31, %c8_32] : memref<8x9xf32, #tpu.memory_space<vmem>>, vector<8x1xf32>
    %95 = vector.broadcast %94 : vector<8x1xf32> to vector<8x512xf32>
    %96 = arith.mulf %93, %95 : vector<8x512xf32>
    %97 = arith.addf %89, %96 : vector<8x512xf32>
    %c0_33 = arith.constant 0 : index
    %c0_34 = arith.constant 0 : index
    %98 = vector.load %arg5[%c0_33, %c0_34] : memref<8x1xf32, #tpu.memory_space<vmem>>, vector<8x1xf32>
    %99 = vector.broadcast %98 : vector<8x1xf32> to vector<8x512xf32>
    %100 = arith.addf %97, %99 : vector<8x512xf32>
    %cst_35 = arith.constant 0.000000e+00 : f32
    %101 = vector.broadcast %cst_35 : f32 to vector<8x512xf32>
    %102 = arith.maximumf %100, %101 : vector<8x512xf32>
    %103 = vector.extract_strided_slice %2 {offsets = [0, 0], sizes = [4, 1], strides = [1, 1]} : vector<4x8xf32> to vector<4x1xf32>
    %104 = vector.extract_strided_slice %102 {offsets = [0, 0], sizes = [1, 512], strides = [1, 1]} : vector<8x512xf32> to vector<1x512xf32>
    %105 = vector.broadcast %103 : vector<4x1xf32> to vector<4x512xf32>
    %106 = vector.broadcast %104 : vector<1x512xf32> to vector<4x512xf32>
    %107 = arith.mulf %105, %106 : vector<4x512xf32>
    %108 = vector.extract_strided_slice %2 {offsets = [0, 1], sizes = [4, 1], strides = [1, 1]} : vector<4x8xf32> to vector<4x1xf32>
    %109 = vector.extract_strided_slice %102 {offsets = [1, 0], sizes = [1, 512], strides = [1, 1]} : vector<8x512xf32> to vector<1x512xf32>
    %110 = vector.broadcast %108 : vector<4x1xf32> to vector<4x512xf32>
    %111 = vector.broadcast %109 : vector<1x512xf32> to vector<4x512xf32>
    %112 = arith.mulf %110, %111 : vector<4x512xf32>
    %113 = arith.addf %107, %112 : vector<4x512xf32>
    %114 = vector.extract_strided_slice %2 {offsets = [0, 2], sizes = [4, 1], strides = [1, 1]} : vector<4x8xf32> to vector<4x1xf32>
    %115 = vector.extract_strided_slice %102 {offsets = [2, 0], sizes = [1, 512], strides = [1, 1]} : vector<8x512xf32> to vector<1x512xf32>
    %116 = vector.broadcast %114 : vector<4x1xf32> to vector<4x512xf32>
    %117 = vector.broadcast %115 : vector<1x512xf32> to vector<4x512xf32>
    %118 = arith.mulf %116, %117 : vector<4x512xf32>
    %119 = arith.addf %113, %118 : vector<4x512xf32>
    %120 = vector.extract_strided_slice %2 {offsets = [0, 3], sizes = [4, 1], strides = [1, 1]} : vector<4x8xf32> to vector<4x1xf32>
    %121 = vector.extract_strided_slice %102 {offsets = [3, 0], sizes = [1, 512], strides = [1, 1]} : vector<8x512xf32> to vector<1x512xf32>
    %122 = vector.broadcast %120 : vector<4x1xf32> to vector<4x512xf32>
    %123 = vector.broadcast %121 : vector<1x512xf32> to vector<4x512xf32>
    %124 = arith.mulf %122, %123 : vector<4x512xf32>
    %125 = arith.addf %119, %124 : vector<4x512xf32>
    %126 = vector.extract_strided_slice %2 {offsets = [0, 4], sizes = [4, 1], strides = [1, 1]} : vector<4x8xf32> to vector<4x1xf32>
    %127 = vector.extract_strided_slice %102 {offsets = [4, 0], sizes = [1, 512], strides = [1, 1]} : vector<8x512xf32> to vector<1x512xf32>
    %128 = vector.broadcast %126 : vector<4x1xf32> to vector<4x512xf32>
    %129 = vector.broadcast %127 : vector<1x512xf32> to vector<4x512xf32>
    %130 = arith.mulf %128, %129 : vector<4x512xf32>
    %131 = arith.addf %125, %130 : vector<4x512xf32>
    %132 = vector.extract_strided_slice %2 {offsets = [0, 5], sizes = [4, 1], strides = [1, 1]} : vector<4x8xf32> to vector<4x1xf32>
    %133 = vector.extract_strided_slice %102 {offsets = [5, 0], sizes = [1, 512], strides = [1, 1]} : vector<8x512xf32> to vector<1x512xf32>
    %134 = vector.broadcast %132 : vector<4x1xf32> to vector<4x512xf32>
    %135 = vector.broadcast %133 : vector<1x512xf32> to vector<4x512xf32>
    %136 = arith.mulf %134, %135 : vector<4x512xf32>
    %137 = arith.addf %131, %136 : vector<4x512xf32>
    %138 = vector.extract_strided_slice %2 {offsets = [0, 6], sizes = [4, 1], strides = [1, 1]} : vector<4x8xf32> to vector<4x1xf32>
    %139 = vector.extract_strided_slice %102 {offsets = [6, 0], sizes = [1, 512], strides = [1, 1]} : vector<8x512xf32> to vector<1x512xf32>
    %140 = vector.broadcast %138 : vector<4x1xf32> to vector<4x512xf32>
    %141 = vector.broadcast %139 : vector<1x512xf32> to vector<4x512xf32>
    %142 = arith.mulf %140, %141 : vector<4x512xf32>
    %143 = arith.addf %137, %142 : vector<4x512xf32>
    %144 = vector.extract_strided_slice %2 {offsets = [0, 7], sizes = [4, 1], strides = [1, 1]} : vector<4x8xf32> to vector<4x1xf32>
    %145 = vector.extract_strided_slice %102 {offsets = [7, 0], sizes = [1, 512], strides = [1, 1]} : vector<8x512xf32> to vector<1x512xf32>
    %146 = vector.broadcast %144 : vector<4x1xf32> to vector<4x512xf32>
    %147 = vector.broadcast %145 : vector<1x512xf32> to vector<4x512xf32>
    %148 = arith.mulf %146, %147 : vector<4x512xf32>
    %149 = arith.addf %143, %148 : vector<4x512xf32>
    %c0_36 = arith.constant 0 : index
    %c0_37 = arith.constant 0 : index
    %150 = vector.load %arg7[%c0_36, %c0_37] : memref<4x1xf32, #tpu.memory_space<vmem>>, vector<4x1xf32>
    %151 = vector.broadcast %150 : vector<4x1xf32> to vector<4x512xf32>
    %152 = arith.addf %149, %151 : vector<4x512xf32>
    %153 = arith.addf %152, %0 : vector<4x512xf32>
    %c0_38 = arith.constant 0 : index
    %c0_39 = arith.constant 0 : index
    %154 = vector.load %arg8[%c0_38, %c0_39] : memref<4x512xf32, #tpu.memory_space<vmem>>, vector<4x512xf32>
    tpu.vector_store %arg8[%c0_38, %c0_39], %153 {strides = array<i32>} : memref<4x512xf32, #tpu.memory_space<vmem>>, vector<4x512xf32>,
    return
  }
}

</mosaic_0001>

<bundles_post_ra>
// kernel: tpu_custom_call.1
= control target key start
LH: loop header
LB: loop body
LE: loop exit
PB: predicated region body
PF: predicated region fallthrough
CT: control target
= control target key end

     0   :  { %13 = vsyncpa [#allocation3], 0  ;;  %s1155_s0 = inlined_call_operand.vmem [shape: f32[4,512], index: 0, kind: input, shape index: {}]   ;;  %s1156_s1 = inlined_call_operand.vmem [shape: f32[8,4], index: 1, kind: input, shape index: {}]   ;;  %s1157_s2 = inlined_call_operand.vmem [shape: f32[8,1], index: 2, kind: input, shape index: {}]   ;;  %s1158_s3 = inlined_call_operand.vmem [shape: f32[8,9], index: 3, kind: input, shape index: {}]   ;;  %s1159_s4 = inlined_call_operand.hbm [shape: f32[9,512], index: 4, kind: input, shape index: {}]   ;;  %s1160_s5 = inlined_call_operand.vmem [shape: f32[8,1], index: 5, kind: input, shape index: {}]   ;;  %s1161_s6 = inlined_call_operand.vmem [shape: f32[4,8], index: 6, kind: input, shape index: {}]   ;;  %s1162_s7 = inlined_call_operand.vmem [shape: f32[4,1], index: 7, kind: input, shape index: {}]   ;;  %s1163_s8 = inlined_call_operand.hbm [shape: f32[4,512], index: 8, kind: output, shape index: {}]  }
   0x1   :  { %14 = vsyncpa [#allocation4], 0  ;;  %s27_s29 = sshll.u32 %s1159_s4, 4  ;;  %s780_s30 = smov [#allocation2]   ;;  %s28_s29 = int_to_ptr.hbm [resolvable:$true] %s27_s29 }
   0x2   :  { %s29_s9 = sshll.u32 %s780_s30, 4  ;;  %s781_s10 = smov 512   ;;  %s30_s9 = int_to_ptr.vmem [resolvable:$true] %s29_s9 }
   0x3   :  { %s782_s11 = smov 32  }
   0x4   :  { %35 = dma.hbm_to_vmem [thread:$0]  %s28_s29, 1024, %s30_s9, [#allocation3], %s781_s10, %s781_s10, %s782_s11  }
   0x5   :  { %776 = dma.done.wait [#allocation3], 1024  }
   0x6   :  { %777 = vsyncadd [#allocation3], 4294966272  ;;  %v783_v0 = vmov 0   ;;  %v784_v1 = vmov 2   ;;  %v48_v2 = vld [vmem:[%s1156_s1] sm:$0xff]  ;;  %v785_v4 = vmov 1  }
   0x7   :  { %705 = vset.pattern.permute.xlu0 %v783_v0  ;;  %707 = vset.pattern.permute.xlu1 %v784_v1  ;;  %v145_v3 = vld [vmem:[%s1157_s2] sm:$0xff]  ;;  %v786_v5 = vmov 3   ;;  %v787_v7 = vmov 4   ;;  %v788_v8 = vmov 5   ;;  %v47_v10 = vld [vmem:[%s1155_s0 + $0x8] sm:$0xff]  ;;  %v789_v11 = vmov 6  }
   0x8   :  { %709 = vset.pattern.permute.xlu2 %v783_v0  ;;  %52 = vperm.xlu0 %705, %v48_v2   ;;  %v863_v6 = vld [vmem:[%s1158_s3] sm:$0xff]  ;;  %641 = vst [vmem:[#allocation1 + $0x10] ss:$2 sm:$0xff] %v47_v10  ;;  %v790_v12 = vmov 7   ;;  %v59_v17 = vperm.slane %v47_v10, 0  ;;  %v60_v18 = vperm.slane %v47_v10, 4 }
   0x9   :  { %98 = vperm.xlu1 %707, %v48_v2   ;;  %148 = vperm.xlu2 %709, %v145_v3   ;;  %v46_v9 = vld [vmem:[%s1155_s0] sm:$0xff]  ;;  %v79_v22 = vperm.slane %v47_v10, 1  ;;  %v80_v23 = vperm.slane %v47_v10, 5  ;;  %v103_v25 = vperm.slane %v47_v10, 2  ;;  %v104_v29 = vperm.slane %v47_v10, 6  ;;  %s791_s0 = smov 17  }
   0xa   :  { %639 = vst [vmem:[#allocation1] ss:$2 sm:$0xff] %v46_v9  ;;  %v57_v14 = vperm.slane %v46_v9, 0  ;;  %v58_v16 = vperm.slane %v46_v9, 4  ;;  %v101_v19 = vperm.slane %v46_v9, 2  ;;  %v77_v20 = vperm.slane %v46_v9, 1 }
   0xb   :  { %v78_v21 = vperm.slane %v46_v9, 5  ;;  %v102_v24 = vperm.slane %v46_v9, 6  ;;  %v125_v26 = vperm.slane %v46_v9, 3  ;;  %v126_v27 = vperm.slane %v46_v9, 7  ;;  %s792_s18 = smov 16   ;;  %s793_s19 = smov 15  }
   0xc   :  { %v65_v28 = vperm.slane %v57_v14, 0  ;;  %v127_v30 = vperm.slane %v47_v10, 3  ;;  %v66_v31 = vperm.slane %v58_v16, 0  ;;  %v67_v32 = vperm.slane %v59_v17, 0  ;;  %s794_s20 = smov 1   ;;  %s795_s21 = smov 127  }
   0xd   :  { %v68_v33 = vperm.slane %v60_v18, 0  ;;  %v109_v34 = vperm.slane %v101_v19, 2  ;;  %v85_v35 = vperm.slane %v77_v20, 1  ;;  %v86_v36 = vperm.slane %v78_v21, 1  ;;  %s796_s22 = smov 113   ;;  %s798_s25 = smov 112  }
   0xe   :  { %v87_v37 = vperm.slane %v79_v22, 1  ;;  %v88_v38 = vperm.slane %v80_v23, 1  ;;  %v110_v39 = vperm.slane %v102_v24, 2  ;;  %v111_v40 = vperm.slane %v103_v25, 2  ;;  %s674_s10 = sshll.u32 %s1163_s8, 4  ;;  %s675_s10 = int_to_ptr.hbm [resolvable:$true] %s674_s10 }
   0xf   :  { %v133_v41 = vperm.slane %v125_v26, 3  ;;  %v134_v42 = vperm.slane %v126_v27, 3  ;;  %v112_v44 = vperm.slane %v104_v29, 2  ;;  %v128_v45 = vperm.slane %v47_v10, 7 }
  0x10   :  { %706 = vset.pattern.permute.xlu0 %v785_v4  ;;  %v135_v46 = vperm.slane %v127_v30, 3  ;;  %vm660_vm8 = vcmask 1043456  }
  0x11   :  { %708 = vset.pattern.permute.xlu1 %v786_v5  ;;  %74 = vperm.xlu0 %706, %v48_v2   ;;  %v136_v9 = vperm.slane %v128_v45, 3  ;;  %v962_v45 = vld [vmem:[#allocation2 + $0x2] ss:$8 sm:$0xf] }
  0x12   :  { %122 = vperm.xlu1 %708, %v48_v2   ;;  %710 = vset.pattern.permute.xlu2 %v787_v7 }
  0x13   :  { %162 = vperm.xlu2 %710, %v863_v6  }
  0x19   :  { %713 = vset.pattern.permute.xlu0 %v784_v1 }
  0x1a   :  { %712 = vset.pattern.permute.xlu1 %v785_v4  ;;  %279 = vperm.xlu0 %713, %v863_v6  }
  0x1b   :  { %239 = vperm.xlu1 %712, %v863_v6   ;;  %711 = vset.pattern.permute.xlu2 %v783_v0 }
  0x1c   :  { %199 = vperm.xlu2 %711, %v863_v6  }
  0x22   :  { %714 = vset.pattern.permute.xlu0 %v786_v5 }
  0x23   :  { %719 = vset.pattern.permute.xlu1 %v783_v0  ;;  %319 = vperm.xlu0 %714, %v863_v6  }
  0x2b   :  { %715 = vset.pattern.permute.xlu0 %v788_v8 }
  0x2c   :  { %359 = vperm.xlu0 %715, %v863_v6  }
  0x34   :  { %716 = vset.pattern.permute.xlu0 %v789_v11 }
  0x35   :  { %399 = vperm.xlu0 %716, %v863_v6  }
  0x3d   :  { %717 = vset.pattern.permute.xlu0 %v790_v12 }
  0x3e   :  { %439 = vperm.xlu0 %717, %v863_v6  }
  0x63   :  { %v149_v20 = vpop.permute.xlu2 %148 }
  0x7a   :  { %v53_v13 = vpop.permute.xlu0 %52 }
  0x7b   :  { %v99_v15 = vpop.permute.xlu1 %98  ;;  %v69_v43 = vmul.f32 %v65_v28, %v53_v13  ;;  %v70_v47 = vmul.f32 %v66_v31, %v53_v13  ;;  %v71_v48 = vmul.f32 %v67_v32, %v53_v13  ;;  %v72_v49 = vmul.f32 %v68_v33, %v53_v13  ;;  %v921_v33 = vpop.permute.xlu2 %162 }
  0x7c   :  { %v113_v50 = vmul.f32 %v109_v34, %v99_v15  ;;  %v114_v57 = vmul.f32 %v110_v39, %v99_v15  ;;  %v115_v58 = vmul.f32 %v111_v40, %v99_v15  ;;  %v116_v16 = vmul.f32 %v112_v44, %v99_v15  ;;  %v490_v44 = vld [vmem:[%s1160_s5] sm:$0xff]  ;;  %s800_s5 = smov [#allocation5]  }
  0x7d   :  { %v797_v32 = vmov 8   ;;  %v177_v40 = vlaneseq }
  0x7e   :  { %718 = vset.pattern.permute.xlu0 %v797_v32 }
  0x83   :  { %v75_v51 = vpop.permute.xlu0 %74 }
  0x84   :  { %v123_v52 = vpop.permute.xlu1 %122  ;;  %v89_v53 = vmul.f32 %v85_v35, %v75_v51  ;;  %v90_v54 = vmul.f32 %v86_v36, %v75_v51  ;;  %v91_v55 = vmul.f32 %v87_v37, %v75_v51  ;;  %v92_v56 = vmul.f32 %v88_v38, %v75_v51  ;;  %v930_v35 = vld [vmem:[%s1161_s6] sm:$0xf]  ;;  %s799_s6 = smov 111  }
  0x85   :  { %v137_v59 = vmul.f32 %v133_v41, %v123_v52  ;;  %v138_v60 = vmul.f32 %v134_v42, %v123_v52  ;;  %v139_v2 = vmul.f32 %v135_v46, %v123_v52  ;;  %v140_v22 = vmul.f32 %v136_v9, %v123_v52 }
  0x86   :  { %v93_v61 = vadd.f32 %v89_v53, %v69_v43  ;;  %v94_v62 = vadd.f32 %v90_v54, %v70_v47  ;;  %v95_v63 = vadd.f32 %v91_v55, %v71_v48  ;;  %v96_v3 = vadd.f32 %v92_v56, %v72_v49  ;;  %v184_v43 = vld [vmem:[#allocation2] ss:$8 sm:$0xf] }
  0x87   :  { %v957_v42 = vand.u32 127, %v177_v40  ;;  %v188_v46 = vperm.slane %v184_v43, 2  ;;  %v266_v47 = vperm.slane %v962_v45, 0  ;;  %v187_v48 = vperm.slane %v184_v43, 1  ;;  %v629_v49 = vld [vmem:[%s1162_s7] sm:$0xf] }
  0x88   :  { %v117_v10 = vadd.f32 %v113_v50, %v93_v61  ;;  %v118_v14 = vadd.f32 %v114_v57, %v94_v62  ;;  %v119_v13 = vadd.f32 %v115_v58, %v95_v63  ;;  %v120_v21 = vadd.f32 %v116_v16, %v96_v3  ;;  %s672_s7 = sshll.u32 %s800_s5, 4  ;;  %s673_s7 = int_to_ptr.vmem [resolvable:$true] %s672_s7 }
  0x89   :  { %vm179_vm0 = vcmp.lt.s32.totalorder %v957_v42, 17  ;;  %vm258_vm1 = vcmp.lt.s32.totalorder %v957_v42, 15  ;;  %v186_v9 = vperm.slane %v184_v43, 0  ;;  %vm218_vm2 = vcmp.lt.s32.totalorder %v957_v42, 16 }
  0x8a   :  { %v141_v17 = vadd.f32 %v137_v59, %v117_v10  ;;  %v142_v18 = vadd.f32 %v138_v60, %v118_v14  ;;  %v143_v19 = vadd.f32 %v139_v2, %v119_v13  ;;  %v144_v29 = vadd.f32 %v140_v22, %v120_v21 }
  0x8b   :  { %v189_v10 = vperm.slane %v184_v43, 3  ;;  %vm298_vm3 = vcmp.lt.s32.totalorder %v957_v42, 1  ;;  %vm338_vm4 = vcmp.lt.s32.totalorder %v957_v42, 127  ;;  %vm378_vm5 = vcmp.lt.s32.totalorder %v957_v42, 113 }
  0x8c   :  { %v151_v23 = vadd.f32 %v149_v20, %v141_v17  ;;  %v152_v24 = vadd.f32 %v149_v20, %v142_v18  ;;  %v153_v25 = vadd.f32 %v149_v20, %v143_v19  ;;  %v154_v15 = vadd.f32 %v149_v20, %v144_v29  ;;  %v916_v31 = vpop.permute.xlu0 %279  ;;  %v224_v20 = vld [vmem:[#allocation2 + $0x1] ss:$8 sm:$0xf] }
  0x8d   :  { %v227_v29 = vperm.slane %v224_v20, 1  ;;  %vm418_vm6 = vcmp.lt.s32.totalorder %v957_v42, 112  ;;  %vm458_vm7 = vcmp.lt.s32.totalorder %v957_v42, 111 }
  0x8e   :  { %v888_v26 = vmax.f32 %v151_v23, 0.0  ;;  %v890_v27 = vmax.f32 %v152_v24, 0.0  ;;  %v892_v28 = vmax.f32 %v153_v25, 0.0  ;;  %v897_v30 = vmax.f32 %v154_v15, 0.0 }
  0x8f   :  { %v226_v24 = vperm.slane %v224_v20, 0  ;;  %v229_v25 = vperm.slane %v224_v20, 3  ;;  %v228_v15 = vperm.slane %v224_v20, 2 }
  0x90   :  { %173 = vrot.lane.b32.xlu0 %v892_v28, %s791_s0  ;;  %171 = vrot.lane.b32.xlu2 %v890_v27, %s791_s0  ;;  %v167_v59 = vmul.f32 %v921_v33, %v892_v28  ;;  %v166_v61 = vmul.f32 %v921_v33, %v890_v27  ;;  %v168_v21 = vmul.f32 %v921_v33, %v897_v30 }
  0x91   :  { %169 = vrot.lane.b32.xlu1 %v888_v26, %s791_s0 }
  0x95   :  { %v925_v34 = vpop.permute.xlu0 %319 }
  0x98   :  { %210 = vrot.lane.b32.xlu0 %v888_v26, %s792_s18  ;;  %214 = vrot.lane.b32.xlu2 %v892_v28, %s792_s18 }
  0x99   :  { %175 = vrot.lane.b32.xlu1 %v897_v30, %s791_s0 }
  0x9e   :  { %v938_v36 = vpop.permute.xlu0 %359 }
  0xa0   :  { %216 = vrot.lane.b32.xlu0 %v897_v30, %s792_s18  ;;  %250 = vrot.lane.b32.xlu2 %v888_v26, %s793_s19 }
  0xa1   :  { %212 = vrot.lane.b32.xlu1 %v890_v27, %s792_s18 }
  0xa7   :  { %v943_v38 = vpop.permute.xlu0 %399 }
  0xa8   :  { %252 = vrot.lane.b32.xlu0 %v890_v27, %s793_s19  ;;  %256 = vrot.lane.b32.xlu2 %v897_v30, %s793_s19 }
  0xa9   :  { %254 = vrot.lane.b32.xlu1 %v892_v28, %s793_s19 }
  0xb0   :  { %292 = vrot.lane.b32.xlu2 %v890_v27, %s794_s20  ;;  %479 = vperm.xlu0 %718, %v863_v6   ;;  %v936_v6 = vpop.permute.xlu2 %199  ;;  %v949_v39 = vpop.permute.xlu0 %439 }
  0xb1   :  { %290 = vrot.lane.b32.xlu1 %v888_v26, %s794_s20 }
  0xb8   :  { %296 = vrot.lane.b32.xlu2 %v897_v30, %s794_s20  ;;  %722 = vset.pattern.permute.xlu0 %v786_v5 }
  0xb9   :  { %294 = vrot.lane.b32.xlu1 %v892_v28, %s794_s20  ;;  %550 = vperm.xlu0 %722, %v930_v35  }
  0xc0   :  { %332 = vrot.lane.b32.xlu2 %v890_v27, %s795_s21 }
  0xc1   :  { %330 = vrot.lane.b32.xlu1 %v888_v26, %s795_s21  ;;  %727 = vset.pattern.permute.xlu0 %v783_v0  ;;  %v953_v0 = vpop.permute.xlu1 %239 }
  0xc2   :  { %632 = vperm.xlu0 %727, %v629_v49  }
  0xc8   :  { %336 = vrot.lane.b32.xlu2 %v897_v30, %s795_s21 }
  0xc9   :  { %334 = vrot.lane.b32.xlu1 %v892_v28, %s795_s21 }
  0xd0   :  { %372 = vrot.lane.b32.xlu2 %v890_v27, %s796_s22 }
  0xd1   :  { %370 = vrot.lane.b32.xlu1 %v888_v26, %s796_s22 }
  0xd8   :  { %376 = vrot.lane.b32.xlu2 %v897_v30, %s796_s22 }
  0xd9   :  { %374 = vrot.lane.b32.xlu1 %v892_v28, %s796_s22 }
  0xe0   :  { %412 = vrot.lane.b32.xlu2 %v890_v27, %s798_s25 }
  0xe1   :  { %410 = vrot.lane.b32.xlu1 %v888_v26, %s798_s25 }
  0xe8   :  { %416 = vrot.lane.b32.xlu2 %v897_v30, %s798_s25 }
  0xe9   :  { %414 = vrot.lane.b32.xlu1 %v892_v28, %s798_s25 }
  0xea   :  { %v172_v37 = vpop.permute.xlu2 %171 }
  0xf0   :  { %452 = vrot.lane.b32.xlu2 %v890_v27, %s799_s6 }
  0xf1   :  { %450 = vrot.lane.b32.xlu1 %v888_v26, %s799_s6 }
  0xf2   :  { %v947_v5 = vpop.permute.xlu2 %214 }
  0xf8   :  { %456 = vrot.lane.b32.xlu2 %v897_v30, %s799_s6 }
  0xf9   :  { %454 = vrot.lane.b32.xlu1 %v892_v28, %s799_s6 }
  0xfa   :  { %v955_v41 = vpop.permute.xlu2 %250 }
 0x100   :  { %506 = vperm.xlu2 %711, %v930_v35  }
 0x101   :  { %493 = vperm.xlu1 %719, %v490_v44  }
 0x102   :  { %v174_v50 = vpop.permute.xlu0 %173  ;;  %v973_v52 = vpop.permute.xlu2 %256 }
 0x103   :  { %v181_v51 = vsel %vm179_vm0, %v172_v37, %v174_v50  ;;  %v170_v53 = vpop.permute.xlu1 %169  ;;  %v262_v55 = vsel %vm258_vm1, %v973_v52, %v955_v41 }
 0x104   :  { %v196_v54 = vmul.f32 %v188_v46, %v181_v51  ;;  %v182_v56 = vsel %vm179_vm0, %v170_v53, %v172_v37  ;;  %v274_v57 = vmul.f32 %v266_v47, %v262_v55  ;;  %v268_v55 = vperm.slane %v962_v45, 2 }
 0x105   :  { %v195_v58 = vmul.f32 %v187_v48, %v182_v56  ;;  %v269_v56 = vperm.slane %v962_v45, 3 }
 0x106   :  { %v204_v60 = vmul.f32 %v936_v6, %v196_v54  ;;  %v282_v62 = vmul.f32 %v916_v31, %v274_v57 }
 0x107   :  { %v203_v63 = vmul.f32 %v936_v6, %v195_v58 }
 0x108   :  { %v208_v2 = vadd.f32 %v204_v60, %v167_v59  ;;  %721 = vset.pattern.permute.xlu2 %v784_v1  ;;  %v165_v1 = vmul.f32 %v921_v33, %v888_v26 }
 0x109   :  { %v207_v3 = vadd.f32 %v203_v63, %v166_v61  ;;  %720 = vset.pattern.permute.xlu1 %v785_v4  ;;  %534 = vperm.xlu2 %721, %v930_v35  }
 0x10a   :  { %518 = vperm.xlu1 %720, %v930_v35   ;;  %v211_v14 = vpop.permute.xlu0 %210  ;;  %v992_v16 = vpop.permute.xlu2 %292 }
 0x10b   :  { %v176_v13 = vpop.permute.xlu1 %175 }
 0x10c   :  { %v180_v17 = vsel %vm179_vm0, %v174_v50, %v176_v13  ;;  %v183_v18 = vsel %vm179_vm0, %v176_v13, %v170_v53  ;;  %v267_v53 = vperm.slane %v962_v45, 1 }
 0x10d   :  { %v194_v19 = vmul.f32 %v186_v9, %v183_v18  ;;  %v197_v4 = vmul.f32 %v189_v10, %v180_v17 }
 0x10f   :  { %v202_v22 = vmul.f32 %v936_v6, %v194_v19  ;;  %v205_v23 = vmul.f32 %v936_v6, %v197_v4 }
 0x111   :  { %v206_v27 = vadd.f32 %v202_v22, %v165_v1  ;;  %v209_v28 = vadd.f32 %v205_v23, %v168_v21  ;;  %724 = vset.pattern.permute.xlu2 %v788_v8 }
 0x112   :  { %723 = vset.pattern.permute.xlu1 %v787_v7  ;;  %v217_v32 = vpop.permute.xlu0 %216  ;;  %582 = vperm.xlu2 %724, %v930_v35   ;;  %v297_v44 = vpop.permute.xlu2 %296 }
 0x113   :  { %v219_v26 = vsel %vm218_vm2, %v947_v5, %v217_v32  ;;  %v222_v30 = vsel %vm218_vm2, %v217_v32, %v211_v14  ;;  %566 = vperm.xlu1 %723, %v930_v35   ;;  %v213_v33 = vpop.permute.xlu1 %212 }
 0x114   :  { %v234_v6 = vmul.f32 %v226_v24, %v222_v30  ;;  %v237_v37 = vmul.f32 %v229_v25, %v219_v26  ;;  %v220_v7 = vsel %vm218_vm2, %v213_v33, %v947_v5  ;;  %v221_v8 = vsel %vm218_vm2, %v211_v14, %v213_v33 }
 0x115   :  { %v235_v40 = vmul.f32 %v227_v29, %v221_v8  ;;  %v236_v43 = vmul.f32 %v228_v15, %v220_v7 }
 0x116   :  { %v242_v46 = vmul.f32 %v953_v0, %v234_v6  ;;  %v245_v47 = vmul.f32 %v953_v0, %v237_v37 }
 0x117   :  { %v243_v48 = vmul.f32 %v953_v0, %v235_v40  ;;  %v244_v49 = vmul.f32 %v953_v0, %v236_v43 }
 0x118   :  { %v246_v50 = vadd.f32 %v242_v46, %v206_v27  ;;  %v249_v51 = vadd.f32 %v245_v47, %v209_v28 }
 0x119   :  { %v247_v54 = vadd.f32 %v243_v48, %v207_v3  ;;  %v248_v5 = vadd.f32 %v244_v49, %v208_v2 }
 0x11a   :  { %v253_v57 = vpop.permute.xlu0 %252  ;;  %v286_v58 = vadd.f32 %v282_v62, %v246_v50  ;;  %726 = vset.pattern.permute.xlu2 %v790_v12  ;;  %v333_v3 = vpop.permute.xlu2 %332 }
 0x11b   :  { %v261_v59 = vsel %vm258_vm1, %v955_v41, %v253_v57  ;;  %725 = vset.pattern.permute.xlu1 %v789_v11  ;;  %v255_v60 = vpop.permute.xlu1 %254  ;;  %614 = vperm.xlu2 %726, %v930_v35   ;;  %v304_v11 = vld [vmem:[#allocation2 + $0x3] ss:$8 sm:$0xf] }
 0x11c   :  { %v275_v0 = vmul.f32 %v267_v53, %v261_v59  ;;  %v259_v61 = vsel %vm258_vm1, %v255_v60, %v973_v52  ;;  %v260_v63 = vsel %vm258_vm1, %v253_v57, %v255_v60  ;;  %598 = vperm.xlu1 %725, %v930_v35   ;;  %v306_v14 = vperm.slane %v304_v11, 0  ;;  %v424_v60 = vld [vmem:[#allocation2 + $0x7] ss:$8 sm:$0xf] }
 0x11d   :  { %v276_v45 = vmul.f32 %v268_v55, %v260_v63  ;;  %v277_v62 = vmul.f32 %v269_v56, %v259_v61  ;;  %v307_v13 = vperm.slane %v304_v11, 1  ;;  %v308_v22 = vperm.slane %v304_v11, 2  ;;  %v384_v55 = vld [vmem:[#allocation2 + $0x6] ss:$8 sm:$0xf] }
 0x11e   :  { %v283_v41 = vmul.f32 %v916_v31, %v275_v0  ;;  %v309_v23 = vperm.slane %v304_v11, 3  ;;  %v386_v61 = vperm.slane %v384_v55, 0 }
 0x11f   :  { %v284_v2 = vmul.f32 %v916_v31, %v276_v45  ;;  %v285_v12 = vmul.f32 %v916_v31, %v277_v62  ;;  %v389_v45 = vperm.slane %v384_v55, 3  ;;  %v387_v62 = vperm.slane %v384_v55, 1 }
 0x120   :  { %v287_v9 = vadd.f32 %v283_v41, %v247_v54  ;;  %v388_v41 = vperm.slane %v384_v55, 2 }
 0x121   :  { %v288_v52 = vadd.f32 %v284_v2, %v248_v5  ;;  %v289_v10 = vadd.f32 %v285_v12, %v249_v51  ;;  %v426_v2 = vperm.slane %v424_v60, 0  ;;  %v429_v12 = vperm.slane %v424_v60, 3 }
 0x122   :  { %v337_v24 = vpop.permute.xlu2 %336 }
 0x123   :  { %v291_v17 = vpop.permute.xlu1 %290 }
 0x124   :  { %v301_v35 = vsel %vm298_vm3, %v291_v17, %v992_v16  ;;  %v302_v18 = vsel %vm298_vm3, %v297_v44, %v291_v17 }
 0x125   :  { %v314_v19 = vmul.f32 %v306_v14, %v302_v18  ;;  %v315_v4 = vmul.f32 %v307_v13, %v301_v35  ;;  %v428_v35 = vperm.slane %v424_v60, 2  ;;  %v464_v18 = vld [vmem:[#allocation2 + $0x20] ss:$8 sm:$0xf] }
 0x127   :  { %v322_v31 = vmul.f32 %v925_v34, %v314_v19  ;;  %v323_v20 = vmul.f32 %v925_v34, %v315_v4 }
 0x129   :  { %v1049_v1 = vadd.f32 %v322_v31, %v286_v58  ;;  %v1051_v21 = vadd.f32 %v323_v20, %v287_v9 }
 0x12a   :  { %v373_v37 = vpop.permute.xlu2 %372 }
 0x12b   :  { %v295_v25 = vpop.permute.xlu1 %294 }
 0x12c   :  { %v299_v27 = vsel %vm298_vm3, %v295_v25, %v297_v44  ;;  %v300_v28 = vsel %vm298_vm3, %v992_v16, %v295_v25  ;;  %v344_v16 = vld [vmem:[#allocation2 + $0x5] ss:$8 sm:$0xf] }
 0x12d   :  { %v316_v29 = vmul.f32 %v308_v22, %v300_v28  ;;  %v317_v15 = vmul.f32 %v309_v23, %v299_v27  ;;  %v346_v48 = vperm.slane %v344_v16, 0  ;;  %v349_v49 = vperm.slane %v344_v16, 3 }
 0x12e   :  { %v347_v51 = vperm.slane %v344_v16, 1  ;;  %v348_v54 = vperm.slane %v344_v16, 2  ;;  %v468_v16 = vperm.slane %v464_v18, 2 }
 0x12f   :  { %v324_v32 = vmul.f32 %v925_v34, %v316_v29  ;;  %v325_v26 = vmul.f32 %v925_v34, %v317_v15  ;;  %v469_v15 = vperm.slane %v464_v18, 3 }
 0x131   :  { %v1060_v30 = vadd.f32 %v324_v32, %v288_v52  ;;  %v1062_v33 = vadd.f32 %v325_v26, %v289_v10  ;;  %v427_v10 = vperm.slane %v424_v60, 1 }
 0x132   :  { %v377_v8 = vpop.permute.xlu2 %376 }
 0x133   :  { %v331_v6 = vpop.permute.xlu1 %330 }
 0x134   :  { %v341_v50 = vsel %vm338_vm4, %v331_v6, %v333_v3  ;;  %v342_v34 = vsel %vm338_vm4, %v337_v24, %v331_v6 }
 0x135   :  { %v354_v57 = vmul.f32 %v346_v48, %v341_v50  ;;  %v357_v59 = vmul.f32 %v349_v49, %v342_v34 }
 0x137   :  { %v362_v11 = vmul.f32 %v938_v36, %v354_v57 }
 0x13a   :  { %v413_v43 = vpop.permute.xlu2 %412 }
 0x13b   :  { %v335_v7 = vpop.permute.xlu1 %334 }
 0x13c   :  { %v340_v5 = vsel %vm338_vm4, %v333_v3, %v335_v7  ;;  %v339_v58 = vsel %vm338_vm4, %v335_v7, %v337_v24  ;;  %v365_v3 = vmul.f32 %v938_v36, %v357_v59  ;;  %v366_v7 = vadd.f32 %v362_v11, %v1049_v1 }
 0x13d   :  { %v355_v0 = vmul.f32 %v347_v51, %v340_v5  ;;  %v356_v63 = vmul.f32 %v348_v54, %v339_v58  ;;  %v480_v54 = vpop.permute.xlu0 %479 }
 0x13f   :  { %v363_v14 = vmul.f32 %v938_v36, %v355_v0  ;;  %v364_v4 = vmul.f32 %v938_v36, %v356_v63  ;;  %v466_v36 = vperm.slane %v464_v18, 0 }
 0x141   :  { %v367_v51 = vadd.f32 %v363_v14, %v1051_v21  ;;  %v368_v1 = vadd.f32 %v364_v4, %v1060_v30 }
 0x142   :  { %v417_v46 = vpop.permute.xlu2 %416 }
 0x143   :  { %v371_v40 = vpop.permute.xlu1 %370 }
 0x144   :  { %v381_v13 = vsel %vm378_vm5, %v371_v40, %v373_v37  ;;  %v382_v17 = vsel %vm378_vm5, %v377_v8, %v371_v40 }
 0x145   :  { %v394_v27 = vmul.f32 %v386_v61, %v381_v13  ;;  %v397_v28 = vmul.f32 %v389_v45, %v382_v17 }
 0x147   :  { %v402_v48 = vmul.f32 %v943_v38, %v394_v27  ;;  %v405_v49 = vmul.f32 %v943_v38, %v397_v28 }
 0x149   :  { %v406_v0 = vadd.f32 %v402_v48, %v366_v7 }
 0x14a   :  { %v1065_v56 = vpop.permute.xlu2 %452 }
 0x14b   :  { %v375_v44 = vpop.permute.xlu1 %374 }
 0x14c   :  { %v379_v9 = vsel %vm378_vm5, %v375_v44, %v377_v8  ;;  %v380_v52 = vsel %vm378_vm5, %v373_v37, %v375_v44  ;;  %v369_v8 = vadd.f32 %v365_v3, %v1062_v33 }
 0x14d   :  { %v395_v22 = vmul.f32 %v387_v62, %v380_v52  ;;  %v396_v23 = vmul.f32 %v388_v41, %v379_v9 }
 0x14e   :  { %v409_v61 = vadd.f32 %v405_v49, %v369_v8 }
 0x14f   :  { %v403_v44 = vmul.f32 %v943_v38, %v395_v22 }
 0x151   :  { %v407_v21 = vadd.f32 %v403_v44, %v367_v51 }
 0x152   :  { %v457_v29 = vpop.permute.xlu2 %456 }
 0x153   :  { %v411_v47 = vpop.permute.xlu1 %410 }
 0x154   :  { %v421_v24 = vsel %vm418_vm6, %v411_v47, %v413_v43  ;;  %v422_v25 = vsel %vm418_vm6, %v417_v46, %v411_v47  ;;  %v467_v47 = vperm.slane %v464_v18, 1 }
 0x155   :  { %v434_v40 = vmul.f32 %v426_v2, %v421_v24 }
 0x157   :  { %v442_v55 = vmul.f32 %v949_v39, %v434_v40 }
 0x15a   :  { %v507_v3 = vpop.permute.xlu2 %506 }
 0x15b   :  { %v415_v53 = vpop.permute.xlu1 %414 }
 0x15c   :  { %v419_v31 = vsel %vm418_vm6, %v415_v53, %v417_v46  ;;  %v420_v20 = vsel %vm418_vm6, %v413_v43, %v415_v53  ;;  %v437_v43 = vmul.f32 %v429_v12, %v422_v25  ;;  %v404_v46 = vmul.f32 %v943_v38, %v396_v23  ;;  %v551_v23 = vpop.permute.xlu0 %550 }
 0x15d   :  { %v435_v32 = vmul.f32 %v427_v10, %v420_v20  ;;  %v436_v26 = vmul.f32 %v428_v35, %v419_v31 }
 0x15e   :  { %v445_v57 = vmul.f32 %v949_v39, %v437_v43  ;;  %v408_v59 = vadd.f32 %v404_v46, %v368_v1 }
 0x15f   :  { %v443_v33 = vmul.f32 %v949_v39, %v435_v32  ;;  %v444_v53 = vmul.f32 %v949_v39, %v436_v26  ;;  %v446_v39 = vadd.f32 %v442_v55, %v406_v0 }
 0x160   :  { %v449_v12 = vadd.f32 %v445_v57, %v409_v61 }
 0x161   :  { %v447_v62 = vadd.f32 %v443_v33, %v407_v21  ;;  %v448_v41 = vadd.f32 %v444_v53, %v408_v59 }
 0x163   :  { %v451_v19 = vpop.permute.xlu1 %450  ;;  %v535_v20 = vpop.permute.xlu2 %534 }
 0x164   :  { %v461_v6 = vsel %vm458_vm7, %v451_v19, %v1065_v56  ;;  %v462_v37 = vsel %vm458_vm7, %v457_v29, %v451_v19 }
 0x165   :  { %v474_v50 = vmul.f32 %v466_v36, %v461_v6  ;;  %v477_v34 = vmul.f32 %v469_v15, %v462_v37 }
 0x167   :  { %v482_v63 = vmul.f32 %v480_v54, %v474_v50  ;;  %v485_v45 = vmul.f32 %v480_v54, %v477_v34 }
 0x169   :  { %v489_v10 = vadd.f32 %v485_v45, %v449_v12  ;;  %v486_v42 = vadd.f32 %v482_v63, %v446_v39 }
 0x16b   :  { %v455_v5 = vpop.permute.xlu1 %454 }
 0x16c   :  { %v459_v58 = vsel %vm458_vm7, %v455_v5, %v457_v29  ;;  %v460_v38 = vsel %vm458_vm7, %v1065_v56, %v455_v5 }
 0x16d   :  { %v475_v30 = vmul.f32 %v467_v47, %v460_v38  ;;  %v476_v60 = vmul.f32 %v468_v16, %v459_v58  ;;  %v583_v58 = vpop.permute.xlu2 %582 }
 0x16f   :  { %v483_v11 = vmul.f32 %v480_v54, %v475_v30  ;;  %v484_v2 = vmul.f32 %v480_v54, %v476_v60 }
 0x171   :  { %v487_v9 = vadd.f32 %v483_v11, %v447_v62  ;;  %v488_v52 = vadd.f32 %v484_v2, %v448_v41 }
 0x173   :  { %v494_v56 = vpop.permute.xlu1 %493 }
 0x174   :  { %v496_v14 = vadd.f32 %v494_v56, %v486_v42  ;;  %v497_v13 = vadd.f32 %v494_v56, %v487_v9  ;;  %v498_v17 = vadd.f32 %v494_v56, %v488_v52  ;;  %v499_v35 = vadd.f32 %v494_v56, %v489_v10 }
 0x176   :  { %v1112_v18 = vmax.f32 %v496_v14, 0.0  ;;  %v1114_v19 = vmax.f32 %v497_v13, 0.0  ;;  %v1116_v4 = vmax.f32 %v498_v17, 0.0  ;;  %v1118_v31 = vmax.f32 %v499_v35, 0.0 }
 0x178   :  { %v553_v22 = vperm.slane %v1112_v18, 3  ;;  %v554_v24 = vperm.slane %v1114_v19, 3  ;;  %v555_v25 = vperm.slane %v1116_v4, 3  ;;  %v556_v27 = vperm.slane %v1118_v31, 3 }
 0x179   :  { %v510_v28 = vperm.slane %v1114_v19, 0  ;;  %v511_v29 = vperm.slane %v1116_v4, 0  ;;  %v512_v36 = vperm.slane %v1118_v31, 0  ;;  %v522_v26 = vperm.slane %v1114_v19, 1 }
 0x17a   :  { %v557_v32 = vmul.f32 %v553_v22, %v551_v23  ;;  %v538_v6 = vperm.slane %v1114_v19, 2  ;;  %v539_v37 = vperm.slane %v1116_v4, 2  ;;  %v523_v8 = vperm.slane %v1116_v4, 1 }
 0x17b   :  { %v514_v7 = vmul.f32 %v510_v28, %v507_v3  ;;  %v524_v40 = vperm.slane %v1118_v31, 1  ;;  %v540_v43 = vperm.slane %v1118_v31, 2  ;;  %v515_v44 = vmul.f32 %v511_v29, %v507_v3 }
 0x17c   :  { %v519_v15 = vpop.permute.xlu1 %518  ;;  %v516_v46 = vmul.f32 %v512_v36, %v507_v3  ;;  %v509_v47 = vperm.slane %v1112_v18, 0  ;;  %v521_v16 = vperm.slane %v1112_v18, 1  ;;  %v542_v48 = vmul.f32 %v538_v6, %v535_v20 }
 0x17d   :  { %v526_v49 = vmul.f32 %v522_v26, %v519_v15  ;;  %v527_v50 = vmul.f32 %v523_v8, %v519_v15  ;;  %v528_v34 = vmul.f32 %v524_v40, %v519_v15  ;;  %v543_v51 = vmul.f32 %v539_v37, %v535_v20  ;;  %v615_v37 = vpop.permute.xlu2 %614 }
 0x17e   :  { %v513_v1 = vmul.f32 %v509_v47, %v507_v3  ;;  %v525_v33 = vmul.f32 %v521_v16, %v519_v15  ;;  %v537_v53 = vperm.slane %v1112_v18, 2  ;;  %v544_v54 = vmul.f32 %v540_v43, %v535_v20 }
 0x17f   :  { %v530_v5 = vadd.f32 %v526_v49, %v514_v7  ;;  %v531_v55 = vadd.f32 %v527_v50, %v515_v44  ;;  %v532_v57 = vadd.f32 %v528_v34, %v516_v46  ;;  %v558_v38 = vmul.f32 %v554_v24, %v551_v23 }
 0x180   :  { %v559_v21 = vmul.f32 %v555_v25, %v551_v23  ;;  %v529_v59 = vadd.f32 %v525_v33, %v513_v1  ;;  %v541_v30 = vmul.f32 %v537_v53, %v535_v20  ;;  %v569_v63 = vperm.slane %v1112_v18, 4 }
 0x181   :  { %v546_v60 = vadd.f32 %v542_v48, %v530_v5  ;;  %v547_v0 = vadd.f32 %v543_v51, %v531_v55  ;;  %v548_v61 = vadd.f32 %v544_v54, %v532_v57  ;;  %v570_v62 = vperm.slane %v1114_v19, 4 }
 0x182   :  { %v545_v45 = vadd.f32 %v541_v30, %v529_v59  ;;  %v571_v41 = vperm.slane %v1116_v4, 4  ;;  %v572_v11 = vperm.slane %v1118_v31, 4  ;;  %v560_v39 = vmul.f32 %v556_v27, %v551_v23  ;;  %v645_v59 = vld.sshfl [vmem:[#allocation1 + $0x18] sm:$0xff pattern:$0x75316420] }
 0x183   :  { %v586_v3 = vperm.slane %v1114_v19, 5  ;;  %v587_v9 = vperm.slane %v1116_v4, 5  ;;  %v562_v14 = vadd.f32 %v558_v38, %v546_v60  ;;  %v563_v13 = vadd.f32 %v559_v21, %v547_v0  ;;  %v643_v21 = vld.sshfl [vmem:[#allocation1 + $0x8] sm:$0xff pattern:$0x75316420] }
 0x184   :  { %v561_v52 = vadd.f32 %v557_v32, %v545_v45  ;;  %v564_v17 = vadd.f32 %v560_v39, %v548_v61  ;;  %v588_v35 = vperm.slane %v1118_v31, 5  ;;  %v585_v23 = vperm.slane %v1112_v18, 5  ;;  %v644_v45 = vld.sshfl [vmem:[#allocation1 + $0x10] sm:$0xff pattern:$0x75316420] }
 0x185   :  { %v567_v2 = vpop.permute.xlu1 %566  ;;  %v617_v27 = vperm.slane %v1112_v18, 7  ;;  %v618_v28 = vperm.slane %v1114_v19, 7  ;;  %v619_v29 = vperm.slane %v1116_v4, 7  ;;  %v620_v36 = vperm.slane %v1118_v31, 7 }
 0x186   :  { %v573_v12 = vmul.f32 %v569_v63, %v567_v2  ;;  %v574_v10 = vmul.f32 %v570_v62, %v567_v2  ;;  %v575_v42 = vmul.f32 %v571_v41, %v567_v2  ;;  %v576_v56 = vmul.f32 %v572_v11, %v567_v2  ;;  %v642_v63 = vld.sshfl [vmem:[#allocation1] sm:$0xff pattern:$0x75316420] }
 0x187   :  { %v590_v15 = vmul.f32 %v586_v3, %v583_v58  ;;  %v591_v32 = vmul.f32 %v587_v9, %v583_v58  ;;  %v592_v26 = vmul.f32 %v588_v35, %v583_v58  ;;  %v589_v6 = vmul.f32 %v585_v23, %v583_v58 }
 0x188   :  { %v577_v20 = vadd.f32 %v573_v12, %v561_v52  ;;  %v578_v22 = vadd.f32 %v574_v10, %v562_v14  ;;  %v579_v24 = vadd.f32 %v575_v42, %v563_v13  ;;  %v580_v25 = vadd.f32 %v576_v56, %v564_v17 }
 0x189   :  { %v602_v7 = vperm.slane %v1114_v19, 6  ;;  %v603_v8 = vperm.slane %v1116_v4, 6  ;;  %v604_v40 = vperm.slane %v1118_v31, 6  ;;  %v601_v43 = vperm.slane %v1112_v18, 6  ;;  %v633_v31 = vpop.permute.xlu0 %632 }
 0x18a   :  { %v594_v44 = vadd.f32 %v590_v15, %v578_v22  ;;  %v595_v46 = vadd.f32 %v591_v32, %v579_v24  ;;  %v596_v47 = vadd.f32 %v592_v26, %v580_v25  ;;  %v593_v48 = vadd.f32 %v589_v6, %v577_v20 }
 0x18b   :  { %v621_v1 = vmul.f32 %v617_v27, %v615_v37  ;;  %v622_v33 = vmul.f32 %v618_v28, %v615_v37  ;;  %v623_v53 = vmul.f32 %v619_v29, %v615_v37  ;;  %v624_v54 = vmul.f32 %v620_v36, %v615_v37 }
 0x18e   :  { %v599_v16 = vpop.permute.xlu1 %598 }
 0x18f   :  { %v605_v49 = vmul.f32 %v601_v43, %v599_v16  ;;  %v606_v50 = vmul.f32 %v602_v7, %v599_v16  ;;  %v607_v34 = vmul.f32 %v603_v8, %v599_v16  ;;  %v608_v51 = vmul.f32 %v604_v40, %v599_v16 }
 0x191   :  { %v609_v19 = vadd.f32 %v605_v49, %v593_v48  ;;  %v610_v5 = vadd.f32 %v606_v50, %v594_v44  ;;  %v611_v4 = vadd.f32 %v607_v34, %v595_v46  ;;  %v612_v55 = vadd.f32 %v608_v51, %v596_v47 }
 0x193   :  { %v625_v57 = vadd.f32 %v621_v1, %v609_v19  ;;  %v626_v18 = vadd.f32 %v622_v33, %v610_v5  ;;  %v627_v58 = vadd.f32 %v623_v53, %v611_v4  ;;  %v628_v38 = vadd.f32 %v624_v54, %v612_v55 }
 0x195   :  { %v635_v30 = vadd.f32 %v633_v31, %v625_v57  ;;  %v636_v60 = vadd.f32 %v633_v31, %v626_v18  ;;  %v637_v0 = vadd.f32 %v633_v31, %v627_v58  ;;  %v638_v61 = vadd.f32 %v633_v31, %v628_v38 }
 0x197   :  { %v651_v62 = vadd.f32 %v643_v21, %v636_v60  ;;  %v653_v41 = vadd.f32 %v645_v59, %v638_v61  ;;  %v650_v11 = vadd.f32 %v642_v63, %v635_v30  ;;  %v652_v2 = vadd.f32 %v644_v45, %v637_v0 }
 0x199   :  { %v658_v39 = vrot.slane %v651_v62, 4  ;;  %v659_v12 = vrot.slane %v653_v41, 4 }
 0x19b   :  { %v661_v3 = vsel %vm660_vm8, %v650_v11, %v658_v39  ;;  %v662_v9 = vsel %vm660_vm8, %v652_v2, %v659_v12 }
 0x19c   :  { %665 = vst [vmem:[#allocation5] sm:$0xff] %v661_v3 }
 0x19d   :  { %666 = vst [vmem:[#allocation5 + $0x8] sm:$0xff] %v662_v9 }
 0x19e   :  { %677 = dma.vmem_to_hbm [thread:$0]  %s673_s7, 256, %s675_s10, [#allocation4]  }
 0x19f   :  { %778 = dma.done.wait [#allocation4], 256  }
 0x1a0   :  { %779 = vsyncadd [#allocation4], 4294967040 }
 0x1a1   :  { %682 = vsyncpa [#allocation3], 1 }
 0x1a2   :  { %683 = vsyncpa [#allocation4], 1 }

</bundles_post_ra>
